<compile_context>
chip_gen: v7x
topology: tpu7x:2x2x1
jax: 0.10.0
libtpu: 0.0.40
codegen_flags: <defaults>
</compile_context>

<pallas_src>
import math

import jax
import jax.numpy as jnp
from jax.experimental import pallas as pl
from jax.experimental.pallas import tpu as pltpu


# ---------------------------------------------------------------------------
# Pallas kernel: (step-0) sinusoidal encode into VMEM scratch, then per-tile
# fused matmul + bias + residual.
# ---------------------------------------------------------------------------
def _qpe_kernel(q_ref, ef_ref, phase_ref, wf_ref, bf_ref, tproj_ref, out_ref, emb_ref):
    # --- encode_quantify_prioris (flip_sin_to_cos=True), hoisted: j-invariant ---
    @pl.when(pl.program_id(0) == 0)
    def _():
        # arg[b, c] = q[b, c // (2*per_dim)] * freq[c], built as a tiny one-hot matmul
        arg = jnp.dot(q_ref[...], ef_ref[...], preferred_element_type=jnp.float32)
        # cos lanes have phase = pi/2, sin lanes 0  ->  a single EUP op, done once
        emb_ref[...] = jnp.sin(arg + phase_ref[...]).astype(emb_ref.dtype)

    # --- fused quantify_proj + linear_adaln (no nonlinearity between them) ---
    adaln = jnp.dot(emb_ref[...], wf_ref[...],
                    preferred_element_type=jnp.float32)              # (B, TN) f32

    # --- bias + residual add with (flattened) timestep_proj ---
    out_ref[...] = (adaln + bf_ref[...] + tproj_ref[...]).astype(out_ref.dtype)


# ---------------------------------------------------------------------------
# One-time parameter preparation (do NOT call per forward step)
# ---------------------------------------------------------------------------
def prepare_quantify_priori_params(params, *, input_dim, freq_dim,
                                   weights_dtype=jnp.bfloat16):
    """Fuses the two Linear layers and builds the encode constants.

    params: w1 (freq_dim, dim), b1 (dim,), w2 (dim, proj_dim), b2 (proj_dim,)
            (PyTorch Linear stores (out, in); here weights are kept (in, out)).
    Returns a dict of device arrays to pass to quantify_priori_embedding().
    """
    half_dim = freq_dim // 2
    per_dim = half_dim // input_dim
    assert input_dim * 2 * per_dim == freq_dim, \
        "choose freq_dim so no zero-padding is needed"
    # TODO(synk): zero-pad path for ragged freq_dim (input_dim*2*per_dim < freq_dim)
    # TODO(synk): dim > 1024 branch (Linear->SiLU->Linear) and before=True path

    # --- encode constants ---
    exponent = -math.log(10000.0) * jnp.arange(per_dim, dtype=jnp.float32) / per_dim
    f = jnp.exp(exponent)                                            # (per_dim,)
    # flip_sin_to_cos=True -> per input dim the layout is [cos block | sin block]
    freqs_full = jnp.tile(jnp.concatenate([f, f]), input_dim)        # (freq_dim,)
    phase = jnp.tile(
        jnp.concatenate([jnp.full((per_dim,), math.pi / 2, jnp.float32),
                         jnp.zeros((per_dim,), jnp.float32)]),
        input_dim).reshape(1, freq_dim)                              # (1, freq_dim)
    # expansion matrix: EF[d, c] = freqs_full[c] if c // (2*per_dim) == d else 0
    block_id = jnp.arange(freq_dim, dtype=jnp.int32) // (2 * per_dim)
    ef = jnp.where(block_id[None, :] ==
                   jnp.arange(input_dim, dtype=jnp.int32)[:, None],
                   freqs_full[None, :], 0.0).astype(jnp.float32)     # (input_dim, freq_dim)

    # --- fuse the two Linear layers (valid: no nonlinearity between them) ---
    w1 = params["w1"].astype(jnp.float32)
    w2 = params["w2"].astype(jnp.float32)
    proj_dim = w2.shape[1]
    w_fused = (w1 @ w2).astype(weights_dtype)                        # (freq_dim, proj_dim)
    b_fused = (params["b1"].astype(jnp.float32) @ w2 +
               params["b2"].astype(jnp.float32)).reshape(1, proj_dim)  # f32

    return {"ef": ef, "phase": phase, "w_fused": w_fused, "b_fused": b_fused}


# ---------------------------------------------------------------------------
# Tile selection for the proj_dim grid axis
# ---------------------------------------------------------------------------
def _pick_tile_n(proj_dim, freq_dim, weight_itemsize,
                 max_tile_bytes=4 << 20, max_lanes=8192):
    """Largest multiple-of-128 divisor of proj_dim whose fused-weight tile stays
    <= max_tile_bytes; prefers multiples of 256 (MXU column width on v6e/v7x)."""
    best = None
    best_key = None
    for tn in range(128, min(proj_dim, max_lanes) + 1, 128):
        if proj_dim % tn:
            continue
        if tn * freq_dim * weight_itemsize > max_tile_bytes:
            continue
        key = (tn % 256 == 0, tn)            # multiple-of-256 first, then largest
        if best_key is None or key > best_key:
            best, best_key = tn, key
    return best if best is not None else proj_dim


# ---------------------------------------------------------------------------
# Steady-state forward (only streams the fused weight; no per-call param work)
# ---------------------------------------------------------------------------
def quantify_priori_embedding(quantify_prioris, timestep_proj, prepared, *,
                              tile_n=None, out_dtype=None):
    """quantify_prioris: (B, input_dim) f32
       timestep_proj:    (B, number, chunk) with number*chunk == proj_dim
       prepared:         output of prepare_quantify_priori_params()."""
    B, input_dim = quantify_prioris.shape
    _, number, chunk = timestep_proj.shape
    proj_dim = number * chunk

    ef, phase = prepared["ef"], prepared["phase"]
    w_fused, b_fused = prepared["w_fused"], prepared["b_fused"]
    freq_dim = ef.shape[1]
    assert ef.shape[0] == input_dim
    assert w_fused.shape == (freq_dim, proj_dim)

    if out_dtype is None:
        out_dtype = timestep_proj.dtype

    q = quantify_prioris.astype(jnp.float32)
    tproj_flat = timestep_proj.reshape(B, proj_dim).astype(jnp.float32)

    if tile_n is None:
        tile_n = _pick_tile_n(proj_dim, freq_dim, jnp.dtype(w_fused.dtype).itemsize)
    assert proj_dim % tile_n == 0
    n_tiles = proj_dim // tile_n

    out_flat = pl.pallas_call(
        _qpe_kernel,
        out_shape=jax.ShapeDtypeStruct((B, proj_dim), out_dtype),
        grid=(n_tiles,),
        in_specs=[
            pl.BlockSpec((B, input_dim), lambda j: (0, 0)),          # q (tiny, resident)
            pl.BlockSpec((input_dim, freq_dim), lambda j: (0, 0)),   # one-hot*freq expansion
            pl.BlockSpec((1, freq_dim), lambda j: (0, 0)),           # phase (pi/2 on cos lanes)
            pl.BlockSpec((freq_dim, tile_n), lambda j: (0, j)),      # fused weight tile (bf16)
            pl.BlockSpec((1, tile_n), lambda j: (0, j)),             # fused bias tile (f32)
            pl.BlockSpec((B, tile_n), lambda j: (0, j)),             # timestep_proj tile
        ],
        out_specs=pl.BlockSpec((B, tile_n), lambda j: (0, j)),
        scratch_shapes=[
            pltpu.VMEM((B, freq_dim), w_fused.dtype),                # cached quant_emb
        ],
        compiler_params=pltpu.CompilerParams(
            # quant_emb scratch is written on step 0 and read by later steps,
            # so the proj_dim axis is "arbitrary" (sequential).
            dimension_semantics=("arbitrary",),
            # explicit limit so v5e's 16 MiB scoped default never shrinks the pipeline
            vmem_limit_bytes=32 << 20),
    )(q, ef, phase, w_fused, b_fused, tproj_flat)

    return out_flat.reshape(B, number, chunk)


# ---------------------------------------------------------------------------
# Pure-JAX reference (mirrors the PyTorch code) for correctness check
# ---------------------------------------------------------------------------
def _encode_ref(q, embedding_dim):
    B, input_dim = q.shape
    per = (embedding_dim // 2) // input_dim
    exponent = -math.log(10000.0) * jnp.arange(per, dtype=jnp.float32) / per
    f = jnp.exp(exponent)
    emb = q[..., None] * f[None, None, :]
    emb = jnp.concatenate([jnp.sin(emb), jnp.cos(emb)], axis=-1)
    emb = jnp.concatenate([emb[:, :, per:], emb[:, :, :per]], axis=-1)  # flip_sin_to_cos
    return emb.reshape(B, -1)


def _forward_ref(q, tproj, params, freq_dim):
    B, number, chunk = tproj.shape
    quant_emb = _encode_ref(q, freq_dim)
    quant_proj = quant_emb @ params["w1"] + params["b1"]
    adaln = quant_proj @ params["w2"] + params["b2"]
    return tproj + adaln.reshape(B, number, chunk)


# ---------------------------------------------------------------------------
if __name__ == "__main__":
    # Module config (dim <= 1024 -> single-Linear adaln branch)
    dim, freq_dim, proj_dim = 256, 256, 768
    B, input_dim = 2, 4
    number, chunk = 6, proj_dim // 6            # timestep_proj: (B, 6, 128)

    key = jax.random.PRNGKey(0)
    k_q, k_t, k_w1, k_b1, k_w2, k_b2 = jax.random.split(key, 6)

    quantify_prioris = jax.random.uniform(k_q, (B, input_dim),
                                          jnp.float32, 0.0, 10.0)
    timestep_proj = jax.random.normal(k_t, (B, number, chunk), jnp.float32)

    params = {
        "w1": jax.random.uniform(k_w1, (freq_dim, dim), jnp.float32,
                                 -1.0, 1.0) / math.sqrt(freq_dim),
        "b1": jax.random.uniform(k_b1, (dim,), jnp.float32,
                                 -1.0, 1.0) / math.sqrt(freq_dim),
        "w2": jax.random.uniform(k_w2, (dim, proj_dim), jnp.float32,
                                 -1.0, 1.0) / math.sqrt(dim),
        "b2": jax.random.uniform(k_b2, (proj_dim,), jnp.float32,
                                 -1.0, 1.0) / math.sqrt(dim),
    }

    # One-time parameter prep (W1@W2 fusion + encode constants) -- outside the
    # steady-state forward, per the performance review.
    prepared = prepare_quantify_priori_params(
        params, input_dim=input_dim, freq_dim=freq_dim,
        weights_dtype=jnp.bfloat16)
    prepared = jax.tree_util.tree_map(jax.block_until_ready, prepared)

    # tile_n=256 forces a 3-step grid so the tiled/pipelined path and the
    # step-0 encode-to-scratch hoist are exercised even at this small shape
    # (auto-pick would use a single 768-lane tile).
    out = quantify_priori_embedding(quantify_prioris, timestep_proj, prepared,
                                    tile_n=256)
    out = jax.block_until_ready(out)

    ref = _forward_ref(quantify_prioris, timestep_proj, params, freq_dim)
    assert out.shape == (B, number, chunk)
    # bf16 fused-weight matmul (f32 accumulate) -> relaxed tolerance vs f32 reference.
    assert jnp.allclose(out, ref, atol=2e-2, rtol=2e-2), \
        f"max err {jnp.max(jnp.abs(out - ref))}"

    # Also check the auto-picked single-tile path.
    out2 = quantify_priori_embedding(quantify_prioris, timestep_proj, prepared)
    out2 = jax.block_until_ready(out2)
    assert jnp.allclose(out2, ref, atol=2e-2, rtol=2e-2), \
        f"max err {jnp.max(jnp.abs(out2 - ref))}"

    print("KERNEL_OK")
</pallas_src>

<mosaic_0001>
module attributes {stable_mosaic.version = 11 : i64} {
  func.func @_qpe_kernel(%arg0: i32, %arg1: memref<2x4xf32, #tpu.memory_space<vmem>>, %arg2: memref<4x256xf32, #tpu.memory_space<vmem>>, %arg3: memref<1x256xf32, #tpu.memory_space<vmem>>, %arg4: memref<256x256xbf16, #tpu.memory_space<vmem>>, %arg5: memref<1x256xf32, #tpu.memory_space<vmem>>, %arg6: memref<2x256xf32, #tpu.memory_space<vmem>>, %arg7: memref<2x256xf32, #tpu.memory_space<vmem>>, %arg8: memref<2x256xbf16, #tpu.memory_space<vmem>>) attributes {dimension_semantics = [#tpu.dimension_semantics<arbitrary>], iteration_bounds = array<i64: 3>, scalar_prefetch = 0 : i64, scratch_operands = 1 : i64, tpu.core_type = #tpu.core_type<tc>, window_params = [{pipeline_mode = #tpu.pipeline_mode<synchronous>, transform_indices = @transform_0, window_bounds = array<i64: 2, 4>}, {pipeline_mode = #tpu.pipeline_mode<synchronous>, transform_indices = @transform_1, window_bounds = array<i64: 4, 256>}, {pipeline_mode = #tpu.pipeline_mode<synchronous>, transform_indices = @transform_2, window_bounds = array<i64: 1, 256>}, {transform_indices = @transform_3, window_bounds = array<i64: 256, 256>}, {transform_indices = @transform_4, window_bounds = array<i64: 1, 256>}, {transform_indices = @transform_5, window_bounds = array<i64: 2, 256>}, {transform_indices = @transform_6, window_bounds = array<i64: 2, 256>}]} {
    %c0_i32 = arith.constant 0 : i32
    %0 = arith.cmpi eq, %arg0, %c0_i32 : i32
    %1 = arith.extui %0 : i1 to i32
    %c0_i32_0 = arith.constant 0 : i32
    %2 = arith.cmpi ne, %1, %c0_i32_0 : i32
    scf.if %2 {
      %c0_10 = arith.constant 0 : index
      %c0_11 = arith.constant 0 : index
      %12 = vector.load %arg1[%c0_10, %c0_11] : memref<2x4xf32, #tpu.memory_space<vmem>>, vector<2x4xf32>
      %c0_12 = arith.constant 0 : index
      %c0_13 = arith.constant 0 : index
      %13 = vector.load %arg2[%c0_12, %c0_13] : memref<4x256xf32, #tpu.memory_space<vmem>>, vector<4x256xf32>
      %cst_14 = arith.constant dense<0.000000e+00> : vector<2x256xf32>
      %14 = tpu.matmul %12, %13, %cst_14 {dimension_numbers = #tpu.dot_dimension_numbers<[1], [0], [0], [1], [0, 0, 1, 1], [], []>} : vector<2x4xf32>, vector<4x256xf32>, vector<2x256xf32> -> vector<2x256xf32>
      %c0_15 = arith.constant 0 : index
      %c0_16 = arith.constant 0 : index
      %15 = vector.load %arg3[%c0_15, %c0_16] : memref<1x256xf32, #tpu.memory_space<vmem>>, vector<1x256xf32>
      %16 = vector.broadcast %15 : vector<1x256xf32> to vector<2x256xf32>
      %17 = arith.addf %14, %16 : vector<2x256xf32>
      %18 = math.sin %17 : vector<2x256xf32>
      %19 = arith.truncf %18 : vector<2x256xf32> to vector<2x256xbf16>
      %c0_17 = arith.constant 0 : index
      %c0_18 = arith.constant 0 : index
      %20 = vector.load %arg8[%c0_17, %c0_18] : memref<2x256xbf16, #tpu.memory_space<vmem>>, vector<2x256xbf16>
      tpu.vector_store %arg8[%c0_17, %c0_18], %19 {strides = array<i32>} : memref<2x256xbf16, #tpu.memory_space<vmem>>, vector<2x256xbf16>,
    } else {
    }
    %c0 = arith.constant 0 : index
    %c0_1 = arith.constant 0 : index
    %3 = vector.load %arg8[%c0, %c0_1] : memref<2x256xbf16, #tpu.memory_space<vmem>>, vector<2x256xbf16>
    %c0_2 = arith.constant 0 : index
    %c0_3 = arith.constant 0 : index
    %4 = vector.load %arg4[%c0_2, %c0_3] : memref<256x256xbf16, #tpu.memory_space<vmem>>, vector<256x256xbf16>
    %cst = arith.constant dense<0.000000e+00> : vector<2x256xf32>
    %5 = tpu.matmul %3, %4, %cst {dimension_numbers = #tpu.dot_dimension_numbers<[1], [0], [0], [1], [0, 0, 1, 1], [], []>} : vector<2x256xbf16>, vector<256x256xbf16>, vector<2x256xf32> -> vector<2x256xf32>
    %c0_4 = arith.constant 0 : index
    %c0_5 = arith.constant 0 : index
    %6 = vector.load %arg5[%c0_4, %c0_5] : memref<1x256xf32, #tpu.memory_space<vmem>>, vector<1x256xf32>
    %7 = vector.broadcast %6 : vector<1x256xf32> to vector<2x256xf32>
    %8 = arith.addf %5, %7 : vector<2x256xf32>
    %c0_6 = arith.constant 0 : index
    %c0_7 = arith.constant 0 : index
    %9 = vector.load %arg6[%c0_6, %c0_7] : memref<2x256xf32, #tpu.memory_space<vmem>>, vector<2x256xf32>
    %10 = arith.addf %8, %9 : vector<2x256xf32>
    %c0_8 = arith.constant 0 : index
    %c0_9 = arith.constant 0 : index
    %11 = vector.load %arg7[%c0_8, %c0_9] : memref<2x256xf32, #tpu.memory_space<vmem>>, vector<2x256xf32>
    tpu.vector_store %arg7[%c0_8, %c0_9], %10 {strides = array<i32>} : memref<2x256xf32, #tpu.memory_space<vmem>>, vector<2x256xf32>,
    return
  }
  func.func @transform_0(%arg0: i32) -> (i32, i32) {
    %c0_i32 = arith.constant 0 : i32
    %c0_i32_0 = arith.constant 0 : i32
    %c0_i32_1 = arith.constant 0 : i32
    return %c0_i32, %c0_i32_0 : i32, i32
  }
  func.func @transform_1(%arg0: i32) -> (i32, i32) {
    %c0_i32 = arith.constant 0 : i32
    %c0_i32_0 = arith.constant 0 : i32
    %c0_i32_1 = arith.constant 0 : i32
    return %c0_i32, %c0_i32_0 : i32, i32
  }
  func.func @transform_2(%arg0: i32) -> (i32, i32) {
    %c0_i32 = arith.constant 0 : i32
    %c0_i32_0 = arith.constant 0 : i32
    %c0_i32_1 = arith.constant 0 : i32
    return %c0_i32, %c0_i32_0 : i32, i32
  }
  func.func @transform_3(%arg0: i32) -> (i32, i32) {
    %c0_i32 = arith.constant 0 : i32
    %c0_i32_0 = arith.constant 0 : i32
    return %c0_i32, %arg0 : i32, i32
  }
  func.func @transform_4(%arg0: i32) -> (i32, i32) {
    %c0_i32 = arith.constant 0 : i32
    %c0_i32_0 = arith.constant 0 : i32
    return %c0_i32, %arg0 : i32, i32
  }
  func.func @transform_5(%arg0: i32) -> (i32, i32) {
    %c0_i32 = arith.constant 0 : i32
    %c0_i32_0 = arith.constant 0 : i32
    return %c0_i32, %arg0 : i32, i32
  }
  func.func @transform_6(%arg0: i32) -> (i32, i32) {
    %c0_i32 = arith.constant 0 : i32
    %c0_i32_0 = arith.constant 0 : i32
    return %c0_i32, %arg0 : i32, i32
  }
}

</mosaic_0001>

<bundles_post_ra>
// kernel: tpu_custom_call.1
= control target key start
LH: loop header
LB: loop body
LE: loop exit
PB: predicated region body
PF: predicated region fallthrough
CT: control target
= control target key end

     0   :  { %s1961_s0 = inlined_call_operand.hbm [shape: f32[2,4], index: 0, kind: input, shape index: {}]   ;;  %s1962_s1 = inlined_call_operand.hbm [shape: f32[4,256], index: 1, kind: input, shape index: {}]   ;;  %s1963_s2 = inlined_call_operand.hbm [shape: f32[1,256], index: 2, kind: input, shape index: {}]   ;;  %s1964_s3 = inlined_call_operand.hbm [shape: bf16[256,768], index: 3, kind: input, shape index: {}]   ;;  %s1965_s4 = inlined_call_operand.vmem [shape: f32[1,768], index: 4, kind: input, shape index: {}]   ;;  %s1966_s5 = inlined_call_operand.vmem [shape: f32[2,768], index: 5, kind: input, shape index: {}]   ;;  %s1967_s6 = inlined_call_operand.hbm [shape: f32[2,768], index: 6, kind: output, shape index: {}]  }
   0x1   :  { %1973 = sst [smem:[#allocation17_spill]] %s1962_s1 }
   0x2   :  { %11 = vsyncpa [#allocation4], 0 }
   0x3   :  { %12 = vsyncpa [#allocation7], 0 }
   0x4   :  { %13 = vsyncpa [#allocation10], 0 }
   0x5   :  { %15 = vsyncpa [#allocation10 + $0x1], 0 }
   0x6   :  { %16 = vsyncpa [#allocation5], 0 }
   0x7   :  { %18 = vsyncpa [#allocation5 + $0x1], 0  ;;  %s1584_s21 = smov 0   ;;  %s1586_s22 = smov 0  }
   0x8   :  { %s1588_s23 = smov 0   ;;  %s1590_s24 = smov 0  }
   0x9 LB: > { %s1605_s25 = sadd.s32 4294967295, %s1530_s24   ;;  %s1114_s26 = sadd.s32 4294967294, %s1530_s24   ;;  %s1530_s24 = sphi %s1590_s24, %s1999_s24   ;;  %s1526_s23 = sphi %s1588_s23, %s1998_s23   ;;  %s1522_s22 = sphi %s1586_s22, %s1997_s22   ;;  %s1518_s21 = sphi %s1584_s21, %s1996_s21  }
   0xa   : > { %s1609_s27 = sadd.s32 1, %s1530_s24   ;;  %s94_s28 = sadd.s32 1, %s1526_s23 }
   0xb   : > { %s91_s29 = ssub.s32 %s1530_s24, %s1609_s27  ;;  %p101_p0 = scmp.ne.s32.totalorder %s1526_s23, %s1522_s22 }
   0xc   : > { %p92_p1 = scmp.eq.s32.totalorder %s91_s29, 0  ;;  %p102_p2 = scmp.eq.s32.totalorder %s1530_s24, 0 }
   0xd   : > { %p107_p3 = scmp.ne.s32.totalorder %s1522_s22, %s1518_s21  ;;  %p1968_p4 = scmp.eq.s32.totalorder %s1605_s25, 0 }
   0xe   : > { %s1621_s30 = scalar_select %p92_p1, %s1526_s23, %s94_s28  }
   0xf   : > { %p1623_p5 = por %p102_p2, %p101_p0  ;;  %p1629_p6 = por %p1968_p4, %p107_p3 }
  0x10   : > { %1974 = sst [smem:[#allocation16_spill]] %s1621_s30  ;;  %p183_p7 = scmp.eq.s32.totalorder %s1605_s25, 2 }
  0x11   : > { %s1976_s8 = scalar_select %p1629_p6, 1, 0 }
  0x12   : > { %p189_p8 = scmp.eq.s32.totalorder %s1114_s26, 2  ;;  %p1115_p9 = scmp.ge.s32.totalorder %s1530_s24, 1 }
  0x13   : > { %p196_p10 = scmp.lt.s32.totalorder %s1530_s24, 4  ;;  %p1636_p11 = por %p183_p7, %p101_p0 }
  0x14   : > { %p1640_p12 = por %p189_p8, %p107_p3  ;;  %s1532_s12 = smov [#allocation6]  }
  0x15   : > { %s1977_s9 = scalar_select %p1636_p11, 1, 0 }
  0x16   : > { %s1978_s10 = scalar_select %p1640_p12, 1, 0 }
  0x17   : > { %p1644_p13 = pnand %p1115_p9, %p196_p10  ;;  %s220_s13 = sshll.u32 %s1532_s12, 4  ;;  %s221_s13 = int_to_ptr.vmem [resolvable:$true] %s220_s13 }
  0x18   : > { %p1233_p4 = scmp.lt.s32.totalorder %s1530_s24, 3  ;;  %p1980_p0 = scmp.eq.s32.totalorder %s1605_s25, 0 }
  0x19   : > { %s1979_s11 = scalar_select %p1644_p13, 1, 0 }
  0x1a   : > { %p1212_p2 = pneg %p1644_p13  ;;  %p1660_p3 = pnand %p1233_p4, %p1623_p5 }
  0x1b   : > { %s1533_s16 = smov [#allocation3]   ;;  %s1983_s1 = sld [smem:[#allocation17_spill]] }
  0x1c   : > { %p1654_p7 = pnand %p1212_p2, %p1980_p0  ;;  %s209_s17 = sshll.u32 %s1533_s16, 4  ;;  %s1664_s17 = int_to_ptr.vmem [resolvable:$true] %s209_s17 }
  0x1d   : > { %s1982_s15 = scalar_select %p1660_p3, 1, 0 }
  0x1e   : > { %p1674_p9 = pneg %p1654_p7 }
  0x21   : > { %s1342_s20 = scalar_lea.hbm %s1983_s1, 128 }
  0x22   : > { %p1343_p8 = scmp.ne.s32.totalorder %s1983_s1, %s1342_s20  ;;  %p1349_p10 = scmp.lt.u32.totalorder %s1342_s20, %s1983_s1 }
  0x24   : > { %p1345_p4 = pnand %p1674_p9, %p1343_p8 }
  0x26   : > { %p1346_p5 = pneg %p1345_p4 }
  0x28   : > { %p1351_p2 = pnand %p1349_p10, %p1346_p5 }
  0x2a   : > { %1354 = shalt.err (!%p1351_p2)
}
  0x2b   : > { %s1355_s16 = scalar_lea.vmem %s221_s13, 128  ;;  %p1363_p11 = scmp.lt.s32.totalorder %s221_s13, %s221_s13 }
  0x2c   : > { %p1356_p0 = scmp.ne.s32.totalorder %s221_s13, %s1355_s16  ;;  %p1364_p6 = scmp.lt.s32.totalorder %s1355_s16, %s1355_s16 }
  0x2e   : > { %p1358_p1 = pnand %p1356_p0, %p1674_p9  ;;  %p1365_p13 = por %p1364_p6, %p1363_p11 }
  0x30   : > { %p1359_p12 = pneg %p1358_p1 }
  0x32   : > { %p1366_p3 = pnand %p1365_p13, %p1359_p12 }
  0x34   : > { %1369 = shalt.err (!%p1366_p3)
}
  0x35   : > { %1218 = dma.hbm_to_vmem [thread:$0]  (!%p1654_p7), %s1983_s1, 128, %s221_s13, [#allocation7]  }
  0x36   : > { %s1370_s28 = scalar_lea.hbm %s1961_s0, 32 }
  0x37   : > { %p1371_p1 = scmp.ne.s32.totalorder %s1961_s0, %s1370_s28  ;;  %p1377_p11 = scmp.lt.u32.totalorder %s1370_s28, %s1961_s0 }
  0x39   : > { %p1373_p8 = pnand %p1371_p1, %p1674_p9 }
  0x3b   : > { %p1374_p6 = pneg %p1373_p8 }
  0x3d   : > { %p1379_p12 = pnand %p1377_p11, %p1374_p6 }
  0x3f   : > { %1382 = shalt.err (!%p1379_p12)
}
  0x40   : > { %s1383_s13 = scalar_lea.vmem %s1664_s17, 32  ;;  %p1391_p5 = scmp.lt.s32.totalorder %s1664_s17, %s1664_s17 }
  0x41   : > { %p1384_p13 = scmp.ne.s32.totalorder %s1664_s17, %s1383_s13  ;;  %p1392_p10 = scmp.lt.s32.totalorder %s1383_s13, %s1383_s13 }
  0x43   : > { %p1386_p3 = pnand %p1384_p13, %p1674_p9  ;;  %p1393_p2 = por %p1392_p10, %p1391_p5 }
  0x45   : > { %p1387_p4 = pneg %p1386_p3 }
  0x47   : > { %p1394_p0 = pnand %p1393_p2, %p1387_p4 }
  0x49   : > { %1397 = shalt.err (!%p1394_p0)
}
  0x4a   : > { %1215 = dma.hbm_to_vmem [thread:$0]  (!%p1654_p7), %s1961_s0, 32, %s1664_s17, [#allocation4]  }
  0x4b   : > { %s1534_s19 = smov [#allocation8]   ;;  %s242_s26 = sand.u32 1, %s1526_s23  }
  0x4c   : > { %s231_s20 = sshll.u32 %s1534_s19, 4  ;;  %s1398_s12 = scalar_lea.hbm %s1963_s2, 32  ;;  %s232_s20 = int_to_ptr.vmem [resolvable:$true] %s231_s20 }
  0x4d   : > { %p1399_p1 = scmp.ne.s32.totalorder %s1963_s2, %s1398_s12  ;;  %p1405_p11 = scmp.lt.u32.totalorder %s1398_s12, %s1963_s2 }
  0x4f   : > { %p1401_p8 = pnand %p1399_p1, %p1674_p9 }
  0x51   : > { %p1402_p6 = pneg %p1401_p8 }
  0x53   : > { %p1407_p12 = pnand %p1405_p11, %p1402_p6 }
  0x55   : > { %1410 = shalt.err (!%p1407_p12)
}
  0x56   : > { %s1411_s17 = scalar_lea.vmem %s232_s20, 32  ;;  %p1419_p5 = scmp.lt.s32.totalorder %s232_s20, %s232_s20 }
  0x57   : > { %p1412_p13 = scmp.ne.s32.totalorder %s232_s20, %s1411_s17  ;;  %p1420_p10 = scmp.lt.s32.totalorder %s1411_s17, %s1411_s17 }
  0x59   : > { %p1414_p3 = pnand %p1412_p13, %p1674_p9  ;;  %p1421_p2 = por %p1420_p10, %p1419_p5 }
  0x5b   : > { %p1415_p4 = pneg %p1414_p3 }
  0x5d   : > { %p1422_p0 = pnand %p1421_p2, %p1415_p4 }
  0x5f   : > { %1425 = shalt.err (!%p1422_p0)
}
  0x60   : > { %1221 = dma.hbm_to_vmem [thread:$0]  (!%p1654_p7), %s1963_s2, 32, %s232_s20, [#allocation7]  }
  0x61   : > { %s1120_s1 = sshll.u32 %s242_s26, 8  ;;  %s1186_s28 = sshll.u32 %s1530_s24, 7 }
  0x62   : > { %s1736_s12 = scalar_lea.hbm %s1964_s3, %s1186_s28  ;;  %s246_s16 = scalar_lea.vmem [#allocation9], %s1120_s1 }
  0x63   : > { %s253_s14 = sshll.u32 %s246_s16, 4  ;;  %s1740_s13 = scalar_lea.sflag [#allocation10], %s242_s26  ;;  %s1738_s14 = int_to_ptr.vmem [resolvable:$true] %s253_s14 }
  0x64   : > { %s1426_s30 = scalar_lea.hbm %s1736_s12, 4096  ;;  %p1985_p7 = scmp.ne.s32.totalorder %s1982_s15, 0 }
  0x65   : > { %p1427_p9 = scmp.ne.s32.totalorder %s1736_s12, %s1426_s30  ;;  %s1431_s18 = scalar_lea.hbm %s1964_s3, 12288 }
  0x66   : > { %p1428_p1 = pneg %p1985_p7  ;;  %p1432_p11 = scmp.lt.u32.totalorder %s1736_s12, %s1964_s3 }
  0x67   : > { %p1433_p12 = scmp.lt.u32.totalorder %s1431_s18, %s1426_s30  ;;  %p1435_p3 = scmp.lt.u32.totalorder %s1426_s30, %s1736_s12 }
  0x68   : > { %p1429_p8 = pnand %p1428_p1, %p1427_p9 }
  0x69   : > { %p1434_p13 = por %p1433_p12, %p1432_p11 }
  0x6a   : > { %p1430_p6 = pneg %p1429_p8 }
  0x6b   : > { %p1436_p4 = por %p1435_p3, %p1434_p13 }
  0x6d   : > { %p1437_p5 = pnand %p1436_p4, %p1430_p6 }
  0x6f   : > { %1440 = shalt.err (!%p1437_p5)
}
  0x70   : > { %s1441_s26 = scalar_lea.vmem %s1738_s14, 4096  ;;  %s1535_s1 = smov [#allocation9]  }
  0x71   : > { %p1442_p10 = scmp.ne.s32.totalorder %s1738_s14, %s1441_s26  ;;  %s1446_s7 = sshll.u32 %s1535_s1, 4  ;;  %s1447_s7 = int_to_ptr.vmem [resolvable:$false] %s1446_s7 }
  0x72   : > { %s1448_s29 = scalar_lea.vmem %s1447_s7, 8192  ;;  %p1449_p9 = scmp.lt.s32.totalorder %s1738_s14, %s1447_s7 }
  0x73   : > { %p1444_p2 = pnand %p1442_p10, %p1428_p1  ;;  %p1450_p8 = scmp.lt.s32.totalorder %s1448_s29, %s1441_s26 }
  0x75   : > { %p1445_p0 = pneg %p1444_p2  ;;  %p1451_p11 = por %p1450_p8, %p1449_p9 }
  0x77   : > { %p1452_p12 = pnand %p1451_p11, %p1445_p0 }
  0x79   : > { %1455 = shalt.err (!%p1452_p12)
}
  0x7a   : > { %s1536_s16 = smov 384   ;;  %s1537_s30 = smov 128  }
  0x7b   : > { %s1538_s20 = smov 8   ;;  %p1986_p1 = scmp.ne.s32.totalorder %s1979_s11, 0 }
  0x7c   : > { %1225 = dma.hbm_to_vmem [thread:$0]  (!%p1985_p7), %s1736_s12, 4096, %s1738_s14, %s1740_s13, %s1536_s16, %s1537_s30, %s1538_s20  }
  0x7d   : > { %282 = sbr.rel (%p1986_p1) target bundleno = 754 (0x2f2), region = 44  ;;  %p1987_p6 = scmp.eq.s32.totalorder (!%p1986_p1), %s1605_s25, 0 }
  0x84   : > { %1501 = dma.done.wait (%p1987_p6), [#allocation4], 32   ;;  %p1988_p13 = pmov %p1987_p6 }
  0x85   : > { %p1989_p3 = pmov %p1987_p6 }
  0x86   : > { %1503 = vsyncadd (%p1988_p13), [#allocation4], 4294967264 }
  0x87   : > { %1505 = dma.done.wait (%p1989_p3), [#allocation7], 160   ;;  %p1990_p4 = pmov %p1989_p3 }
  0x88   : > { %s1779_s17 = sand.u32 1, %s1522_s22   ;;  %p1991_p7 = scmp.ne.s32.totalorder %s1976_s8, 0 }
  0x89   : > { %1507 = vsyncadd (%p1990_p4), [#allocation7], 4294967136  ;;  %s1127_s11 = sshll.u32 %s1779_s17, 8  ;;  %s297_s15 = scalar_lea.sflag [#allocation10], %s1779_s17 }
  0x8a   : > { %s1783_s12 = scalar_lea.vmem [#allocation9], %s1127_s11 }
  0x8b   : > { %1509 = dma.done.wait (%p1991_p7), %s297_s15, 4096  }
  0x8c   : > { %1511 = vsyncadd (%p1991_p7), %s297_s15, 4294963200  ;;  %s1128_s14 = sshll.u32 %s1779_s17, 2  ;;  %s1129_s13 = sshll.u32 %s1605_s25, 1 }
  0x8d   : > { %p340_p5 = scmp.lt.s32.totalorder %s1129_s13, 5  ;;  %s1803_s8 = scalar_lea.vmem [#allocation11], %s1128_s14 }
  0x8e   : > { %p1992_p10 = scmp.ne.s32.totalorder %s1605_s25, 0 }
  0x8f   : > { %s2001_s13 = smov (!%p340_p5, %s1129_s13), 5  ;;  %v356_v0 = vld [vmem:[#allocation6] sm:$0xff] (!%p1992_p10)  ;;  %vm375_vm0 = vcmask (!%p1992_p10), 1043456   ;;  %v1539_v2 = vmov (!%p1992_p10), 0.0   ;;  %v355_v3 = vld [vmem:[#allocation3] sm:$0x3] (!%p1992_p10)  ;;  %v359_v4 = vlaneseq (!%p1992_p10) }
  0x90   : > { %s342_s28 = scalar_lea.vmem %s1965_s4, %s2001_s13  ;;  %s1131_s26 = sshll.u32 %s2001_s13, 1  ;;  %v370_v1 = vcombine.high (!%p1992_p10), %v356_v0, %v356_v0  ;;  %444 = vmatprep.mubr.f32.mxu0 (!%p1992_p10), %v1539_v2  ;;  %vm371_vm1 = vcmask (!%p1992_p10), 31744   ;;  %v357_v7 = vld [vmem:[#allocation8] sm:$0x3] (!%p1992_p10)  ;;  %v1540_v35 = vmov (!%p1992_p10), 683565275  }
  0x91   : > { %s1801_s29 = scalar_lea.vmem %s1966_s5, %s1131_s26  ;;  %354 = sbr.rel (%p1992_p10) target bundleno = 456 (0x1c8), region = 64  ;;  %v1807_v5 = vshrl.u32 (!%p1992_p10), %v359_v4, 7  ;;  %v1541_v39 = vmov (!%p1992_p10), 2475754826   ;;  %v1542_v41 = vmov (!%p1992_p10), 2131351028  }
  0x92   : > { %1133 = vmatprep.subr.msk.mxu0 (!%p1992_p10), %vm375_vm0, %v370_v1  ;;  %v1543_v43 = vmov (!%p1992_p10), 2102212464   ;;  %v1544_v45 = vmov (!%p1992_p10), 920167782   ;;  %v1545_v52 = vmov (!%p1992_p10), 1326507024  }
  0x93   : > { %1134 = vmatpush1.msk.msra.mxu0 (!%p1992_p10), %vm375_vm0, %v356_v0  ;;  %v361_v6 = vsub.s32 (!%p1992_p10), 0, %v1807_v5  ;;  %v365_v8 = vsub.s32 (!%p1992_p10), 1, %v1807_v5 }
  0x94   : > { %1135 = vmatmul.mubr.msk.f32.vlgmr.msra.gmra.mrb[0].mxu0 (!%p1992_p10), %vm371_vm1, %v355_v3 }
  0x95   : > { %v362_v9 = vrot.slane (!%p1992_p10), %v357_v7, %v361_v6  ;;  %v366_v10 = vrot.slane (!%p1992_p10), %v357_v7, %v365_v8 }
 0x167   : > { %v446_v11 = vpop.f32.mrb[0].mxu0 }
 0x168   : > { %v1811_v12 = vadd.f32 %v446_v11, %v362_v9  ;;  %v448_v13 = vpop.f32.mrb[1].mxu0 }
 0x169   : > { %v1813_v14 = vadd.f32 %v448_v13, %v366_v10 }
 0x16a   : > { %v451_v15 = vand.u32 2147483647, %v1811_v12  ;;  %v454_v16 = vand.u32 2139095040, %v1811_v12  ;;  %vm453_vm0 = vcmp.lt.s32.totalorder %v1811_v12, 0 }
 0x16b   : > { %v558_v17 = vand.u32 2139095040, %v1813_v14  ;;  %v555_v20 = vand.u32 2147483647, %v1813_v14 }
 0x16c   : > { %v455_v18 = vshrl.u32 %v454_v16, 23  ;;  %v458_v19 = vand.u32 8388607, %v451_v15  ;;  %vm452_vm1 = vcmp.le.f32.partialorder %v451_v15, 0.7853982 }
 0x16d   : > { %v559_v21 = vshrl.u32 %v558_v17, 23  ;;  %v1823_v26 = vand.u32 8388607, %v555_v20 }
 0x16e   : > { %v1136_v22 = vadd.s32 4294967169, %v455_v18  ;;  %v459_v25 = vor.u32 8388608, %v458_v19 }
 0x16f   : > { %v1140_v23 = vadd.s32 4294967169, %v559_v21  ;;  %v563_v33 = vor.u32 8388608, %v1823_v26 }
 0x170   : > { %v461_v24 = vadd.s32 1, %v1136_v22  ;;  %v1825_v32 = vshll.u32 %v459_v25, 8 }
 0x171   : > { %v565_v27 = vadd.s32 1, %v1140_v23 }
 0x172   : > { %vm462_vm2 = vcmp.gt.s32.totalorder %v461_v24, 0 }
 0x173   : > { %v463_v28 = vsel %vm462_vm2, %v461_v24, 0  ;;  %vm566_vm3 = vcmp.gt.s32.totalorder %v565_v27, 0  ;;  %vm557_vm2 = vcmp.lt.s32.totalorder %v1813_v14, 0 }
 0x174   : > { %v464_v29 = vshrl.u32 %v463_v28, 5  ;;  %v465_v30 = vand.u32 31, %v463_v28  ;;  %v567_v31 = vsel %vm566_vm3, %v565_v27, 0  ;;  %v603_v28 = vshll.u32 %v563_v33, 8 }
 0x175   : > { %v1828_v37 = vshrl.u32 %v567_v31, 5  ;;  %v569_v38 = vand.u32 31, %v567_v31  ;;  %vm556_vm3 = vcmp.le.f32.partialorder %v555_v20, 0.7853982 }
 0x176   : > { %v466_v34 = vsub.s32 32, %v465_v30  ;;  %v468_v36 = vshll.u32 %v1540_v35, %v465_v30  ;;  %v471_v40 = vshll.u32 %v1541_v39, %v465_v30  ;;  %v474_v42 = vshll.u32 %v1542_v41, %v465_v30 }
 0x177   : > { %v477_v44 = vshll.u32 %v1543_v43, %v465_v30  ;;  %v480_v46 = vshll.u32 %v1544_v45, %v465_v30  ;;  %vm483_vm4 = vcmp.lt.s32.totalorder %v464_v29, 1  ;;  %vm484_vm5 = vcmp.lt.s32.totalorder %v464_v29, 2 }
 0x178   : > { %v469_v47 = vshrl.u32 %v1541_v39, %v466_v34  ;;  %v472_v48 = vshrl.u32 %v1542_v41, %v466_v34  ;;  %v475_v49 = vshrl.u32 %v1543_v43, %v466_v34  ;;  %v467_v50 = vshrl.u32 %v1540_v35, %v466_v34 }
 0x179   : > { %v478_v51 = vshrl.u32 %v1544_v45, %v466_v34  ;;  %v481_v53 = vshrl.u32 %v1545_v52, %v466_v34  ;;  %v570_v57 = vsub.s32 32, %v569_v38  ;;  %vm485_vm6 = vcmp.lt.s32.totalorder %v464_v29, 3 }
 0x17a   : > { %v470_v54 = vor.u32 %v469_v47, %v468_v36  ;;  %v473_v55 = vor.u32 %v472_v48, %v471_v40  ;;  %v476_v56 = vor.u32 %v475_v49, %v474_v42  ;;  %vm486_vm7 = vcmp.lt.s32.totalorder %v464_v29, 4 }
 0x17b   : > { %v479_v58 = vor.u32 %v478_v51, %v477_v44  ;;  %v482_v59 = vor.u32 %v481_v53, %v480_v46  ;;  %v572_v3 = vshll.u32 %v1540_v35, %v569_v38  ;;  %v573_v7 = vshrl.u32 %v1541_v39, %v570_v57 }
 0x17c   : > { %v487_v60 = vsel %vm483_vm4, %v467_v50, %v470_v54  ;;  %v488_v61 = vsel %vm486_vm7, %v476_v56, 2102212464  ;;  %v491_v62 = vsel %vm483_vm4, %v470_v54, %v473_v55  ;;  %v495_v63 = vsel %vm483_vm4, %v473_v55, %v476_v56 }
 0x17d   : > { %v489_v0 = vsel %vm485_vm6, %v473_v55, %v488_v61  ;;  %v492_v1 = vsel %vm486_vm7, %v479_v58, 920167782  ;;  %v496_v2 = vsel %vm486_vm7, %v482_v59, 1326507024  ;;  %v575_v8 = vshll.u32 %v1541_v39, %v569_v38 }
 0x17e   : > { %v493_v4 = vsel %vm485_vm6, %v476_v56, %v492_v1  ;;  %v497_v6 = vsel %vm485_vm6, %v479_v58, %v496_v2  ;;  %v490_v9 = vsel %vm484_vm5, %v487_v60, %v489_v0  ;;  %v576_v13 = vshrl.u32 %v1542_v41, %v570_v57 }
 0x17f   : > { %v494_v10 = vsel %vm484_vm5, %v491_v62, %v493_v4  ;;  %v498_v11 = vsel %vm484_vm5, %v495_v63, %v497_v6  ;;  %v574_v21 = vor.u32 %v573_v7, %v572_v3  ;;  %v578_v23 = vshll.u32 %v1542_v41, %v569_v38 }
 0x180   : > { %v1837_v16 = vmul.u32.u64.low %v1825_v32, %v498_v11  ;;  %v1838_v17 = vmul.u32.u64.high %v1825_v32, %v498_v11, %v1837_v16  ;;  %v1841_v18 = vmul.u32.u64.low %v1825_v32, %v494_v10  ;;  %v1842_v19 = vmul.u32.u64.high %v1825_v32, %v494_v10, %v1841_v18 }
 0x181   : > { %v577_v22 = vor.u32 %v576_v13, %v575_v8  ;;  %v579_v24 = vshrl.u32 %v1543_v43, %v570_v57  ;;  %v581_v25 = vshll.u32 %v1543_v43, %v569_v38  ;;  %v582_v26 = vshrl.u32 %v1544_v45, %v570_v57 }
 0x182   : > { %v585_v27 = vshrl.u32 %v1545_v52, %v570_v57  ;;  %v506_v29 = vmul.u32 %v1825_v32, %v490_v9  ;;  %v571_v30 = vshrl.u32 %v1540_v35, %v570_v57  ;;  %v584_v34 = vshll.u32 %v1544_v45, %v569_v38 }
 0x183   : > { %v580_v31 = vor.u32 %v579_v24, %v578_v23  ;;  %vm508_vm8 = vc.u32 %v1838_v17, %v1841_v18  ;;  %v509_v36 = vadd.s32 1, %v1842_v19  ;;  %v583_v39 = vor.u32 %v582_v26, %v581_v25 }
 0x184   : > { %vm587_vm9 = vcmp.lt.s32.totalorder %v1828_v37, 1  ;;  %v586_v40 = vor.u32 %v585_v27, %v584_v34  ;;  %vm589_vm10 = vcmp.lt.s32.totalorder %v1828_v37, 3  ;;  %vm590_vm11 = vcmp.lt.s32.totalorder %v1828_v37, 4 }
 0x185   : > { %v595_v41 = vsel %vm587_vm9, %v574_v21, %v577_v22  ;;  %v510_v33 = vsel %vm508_vm8, %v509_v36, %v1842_v19  ;;  %v592_v42 = vsel %vm590_vm11, %v580_v31, 2102212464  ;;  %v596_v32 = vsel %vm590_vm11, %v583_v39, 920167782 }
 0x186   : > { %v599_v35 = vsel %vm587_vm9, %v577_v22, %v580_v31  ;;  %v511_v43 = vadd.s32 %v510_v33, %v506_v29  ;;  %vm588_vm12 = vcmp.lt.s32.totalorder %v1828_v37, 2  ;;  %v597_v38 = vsel %vm589_vm10, %v580_v31, %v596_v32 }
 0x187   : > { %v600_v44 = vsel %vm590_vm11, %v586_v40, 1326507024  ;;  %v591_v45 = vsel %vm587_vm9, %v571_v30, %v574_v21  ;;  %v593_v46 = vsel %vm589_vm10, %v577_v22, %v592_v42  ;;  %v598_v47 = vsel %vm588_vm12, %v595_v41, %v597_v38 }
 0x188   : > { %v601_v48 = vsel %vm589_vm10, %v583_v39, %v600_v44  ;;  %v512_v49 = vadd.s32 536870912, %v511_v43  ;;  %v1852_v51 = vmul.u32.u64.low %v603_v28, %v598_v47  ;;  %v1853_v52 = vmul.u32.u64.high %v603_v28, %v598_v47, %v1852_v51 }
 0x189   : > { %v602_v50 = vsel %vm588_vm12, %v599_v35, %v601_v48  ;;  %v594_v56 = vsel %vm588_vm12, %v591_v45, %v593_v46  ;;  %v507_v9 = vadd.s32 %v1841_v18, %v1838_v17  ;;  %vm543_vm7 = vweird.f32 %v1811_v12 }
 0x18a   : > { %v1855_v53 = vmul.u32.u64.low %v603_v28, %v602_v50  ;;  %v1856_v54 = vmul.u32.u64.high %v603_v28, %v602_v50, %v1855_v53  ;;  %v513_v55 = vshrl.u32 %v512_v49, 30  ;;  %v613_v58 = vadd.s32 1, %v1853_v52 }
 0x18b   : > { %v610_v37 = vmul.u32 %v603_v28, %v594_v56  ;;  %vm647_vm11 = vweird.f32 %v1813_v14 }
 0x18c   : > { %v514_v57 = vshll.u32 %v513_v55, 30  ;;  %vm612_vm13 = vc.u32 %v1856_v54, %v1852_v51  ;;  %v611_v30 = vadd.s32 %v1852_v51, %v1856_v54  ;;  %v537_v18 = vsub.s32 4, %v513_v55 }
 0x18d   : > { %v614_v60 = vsel %vm612_vm13, %v613_v58, %v1853_v52 }
 0x18e   : > { %v515_v59 = vsub.s32 %v511_v43, %v514_v57  ;;  %v615_v61 = vadd.s32 %v614_v60, %v610_v37  ;;  %v538_v35 = vsel %vm453_vm0, %v537_v18, %v513_v55 }
 0x18f   : > { %v540_v44 = vsel %vm452_vm1, 0, %v538_v35 }
 0x190   : > { %v517_v62 = vsub.s32 0, %v515_v59  ;;  %v616_v63 = vadd.s32 536870912, %v615_v61  ;;  %v544_v49 = vadd.s32 3, %v540_v44 }
 0x192   : > { %v1137_v0 = vmin.u32 %v517_v62, %v515_v59  ;;  %v617_v1 = vshrl.u32 %v616_v63, 30  ;;  %v545_v52 = vand.u32 3, %v544_v49  ;;  %v1546_v62 = vmov 1966171168  }
 0x193   : > { %v665_v63 = vunpack.c.l.s4 %v1546_v62 }
 0x194   : > { %v519_v2 = vclz %v1137_v0  ;;  %v618_v3 = vshll.u32 %v617_v1, 30  ;;  %v641_v48 = vsub.s32 4, %v617_v1  ;;  %vm550_vm4 = vcmp.eq.s32.totalorder %v545_v52, 2 }
 0x195   : > { %vm547_vm5 = vcmp.eq.s32.totalorder %v545_v52, 0  ;;  %vm546_vm6 = vcmp.lt.s32.totalorder %v545_v52, 2 }
 0x196   : > { %v1138_v4 = vadd.s32 4294967294, %v519_v2  ;;  %v619_v6 = vsub.s32 %v615_v61, %v618_v3  ;;  %v642_v51 = vsel %vm557_vm2, %v641_v48, %v617_v1  ;;  %v666_v3 = vunpack.c.0.s8 %v665_v63 }
 0x197   : > { %v644_v55 = vsel %vm556_vm3, 0, %v642_v51 }
 0x198   : > { %vm1139_vm14 = vcmp.lt.s32.totalorder %v1138_v4, 0  ;;  %v621_v8 = vsub.s32 0, %v619_v6 }
 0x199   : > { %v522_v7 = vsel %vm1139_vm14, 0, %v1138_v4 }
 0x19a   : > { %v523_v10 = vsub.s32 32, %v522_v7  ;;  %v527_v11 = vsub.s32 4294967266, %v522_v7  ;;  %v1141_v13 = vmin.u32 %v621_v8, %v619_v6  ;;  %v524_v16 = vshll.u32 %v515_v59, %v522_v7 }
 0x19b   : > { %v648_v59 = vadd.s32 3, %v644_v55 }
 0x19c   : > { %v525_v19 = vshrl.u32 %v507_v9, %v523_v10  ;;  %v528_v21 = vadd.s32 127, %v527_v11  ;;  %v623_v22 = vclz %v1141_v13  ;;  %v669_v9 = vsub.s32 %v666_v3, %v1807_v5 }
 0x19d   : > { %v649_v0 = vand.u32 3, %v648_v59 }
 0x19e   : > { %v526_v23 = vor.u32 %v525_v19, %v524_v16  ;;  %v529_v24 = vshll.u32 %v528_v21, 23  ;;  %v1142_v25 = vadd.s32 4294967294, %v623_v22 }
 0x19f   : > { %vm654_vm8 = vcmp.eq.s32.totalorder %v649_v0, 2  ;;  %vm651_vm9 = vcmp.eq.s32.totalorder %v649_v0, 0  ;;  %vm650_vm10 = vcmp.lt.s32.totalorder %v649_v0, 2 }
 0x1a0   : > { %v530_v26 = vor.u32 4788187, %v529_v24  ;;  %vm1143_vm15 = vcmp.lt.s32.totalorder %v1142_v25, 0  ;;  %v533_v28 = vcvt.s32.f32 %v526_v23 }
 0x1a1   : > { %v626_v29 = vsel %vm1143_vm15, 0, %v1142_v25 }
 0x1a2   : > { %v531_v27 = vand.u32 2147483647, %v530_v26  ;;  %v627_v31 = vsub.s32 32, %v626_v29  ;;  %v631_v34 = vsub.s32 4294967266, %v626_v29  ;;  %v628_v36 = vshll.u32 %v619_v6, %v626_v29 }
 0x1a4   : > { %v534_v17 = vmul.f32 %v533_v28, %v531_v27  ;;  %v629_v39 = vshrl.u32 %v611_v30, %v627_v31  ;;  %v632_v40 = vadd.s32 127, %v631_v34 }
 0x1a6   : > { %v535_v41 = vxor.u32 2147483648, %v534_v17  ;;  %v630_v33 = vor.u32 %v629_v39, %v628_v36  ;;  %v633_v42 = vshll.u32 %v632_v40, 23 }
 0x1a8   : > { %v536_v32 = vsel %vm453_vm0, %v535_v41, %v534_v17  ;;  %v634_v38 = vor.u32 4788187, %v633_v42  ;;  %v637_v46 = vcvt.s32.f32 %v630_v33 }
 0x1a9   : > { %v539_v43 = vsel %vm452_vm1, %v1811_v12, %v536_v32 }
 0x1aa   : > { %1286 = vcosq.f32 %v539_v43  ;;  %v635_v45 = vand.u32 2147483647, %v634_v38 }
 0x1ab   : > { %1288 = vsinq.f32 %v539_v43 }
 0x1ac   : > { %v638_v47 = vmul.f32 %v637_v46, %v635_v45 }
 0x1ae   : > { %v639_v50 = vxor.u32 2147483648, %v638_v47 }
 0x1b0   : > { %v640_v15 = vsel %vm557_vm2, %v639_v50, %v638_v47 }
 0x1b1   : > { %v643_v53 = vsel %vm556_vm3, %v1813_v14, %v640_v15 }
 0x1b2   : > { %1290 = vcosq.f32 %v643_v53 }
 0x1b3   : > { %1292 = vsinq.f32 %v643_v53 }
 0x1b4   : > { %v1287_v54 = vpop.eup %1286 }
 0x1b5   : > { %v1289_v56 = vpop.eup %1288  ;;  %v551_v57 = vxor.u32 2147483648, %v1287_v54 }
 0x1b6   : > { %v548_v58 = vxor.u32 2147483648, %v1289_v56 }
 0x1b7   : > { %v552_v37 = vsel %vm550_vm4, %v551_v57, %v1289_v56 }
 0x1b8   : > { %v549_v60 = vsel %vm547_vm5, %v1287_v54, %v548_v58 }
 0x1b9   : > { %v553_v20 = vsel %vm546_vm6, %v549_v60, %v552_v37 }
 0x1ba   : > { %v554_v61 = vsel %vm543_vm7, nan, %v553_v20 }
 0x1bc   : > { %v1291_v1 = vpop.eup %1290 }
 0x1bd   : > { %v1293_v2 = vpop.eup %1292  ;;  %v655_v4 = vxor.u32 2147483648, %v1291_v1 }
 0x1be   : > { %v652_v6 = vxor.u32 2147483648, %v1293_v2 }
 0x1bf   : > { %v656_v7 = vsel %vm654_vm8, %v655_v4, %v1293_v2 }
 0x1c0   : > { %v653_v8 = vsel %vm651_vm9, %v1291_v1, %v652_v6 }
 0x1c1   : > { %v657_v12 = vsel %vm650_vm10, %v653_v8, %v656_v7 }
 0x1c2   : > { %v658_v10 = vsel %vm647_vm11, nan, %v657_v12 }
 0x1c3   : > { %v1144_v11 = vpack.c.bf16 %v658_v10, %v554_v61 }
 0x1c5   : > { %v670_v13 = vrot.slane %v1144_v11, %v669_v9 }
 0x1c7   : > { %1145 = vst.sshfl [vmem:[#allocation2] sm:$0x5 pattern:$0x73625140] %v670_v13 }
 0x1c8 PF: > { %v1294_v16 = vld [vmem:[%s1783_s12 + $0x4] ss:$8 sps:$4 sm:$0xff]   ;;  %v1296_v19 = vld [vmem:[%s1783_s12] ss:$8 sps:$4 sm:$0xff]   ;;  %v1297_v5 = vld [vmem:[%s1783_s12 + $0x14] ss:$8 sps:$4 sm:$0xff]   ;;  %v715_v26 = vlaneseq }
 0x1c9   : > { %910 = vmatprep.subr.bf16.mxu0 %v1294_v16  ;;  %v1299_v14 = vld [vmem:[%s1783_s12 + $0x10] ss:$8 sps:$4 sm:$0xff]   ;;  %v1300_v21 = vld [vmem:[%s1783_s12 + $0x24] ss:$8 sps:$4 sm:$0xff]   ;;  %v1302_v22 = vld [vmem:[%s1783_s12 + $0x20] ss:$8 sps:$4 sm:$0xff]  }
 0x1ca   : > { %911 = vmatpush1.bf16.msra.mxu0 %v1296_v19  ;;  %v1303_v23 = vld [vmem:[%s1783_s12 + $0x34] ss:$8 sps:$4 sm:$0xff]   ;;  %v1305_v24 = vld [vmem:[%s1783_s12 + $0x30] ss:$8 sps:$4 sm:$0xff]   ;;  %v1306_v25 = vld [vmem:[%s1783_s12 + $0x44] ss:$8 sps:$4 sm:$0xff]  }
 0x1cb   : > { %912 = vmatprep.subr.bf16.mxu0 %v1297_v5  ;;  %v1547_v27 = vmov 1966171168   ;;  %v1308_v29 = vld [vmem:[%s1783_s12 + $0x40] ss:$8 sps:$4 sm:$0xff]   ;;  %v1309_v30 = vld [vmem:[%s1783_s12 + $0x54] ss:$8 sps:$4 sm:$0xff]  }
 0x1cc   : > { %v735_v28 = vunpack.c.l.s4 %v1547_v27  ;;  %v716_v31 = vshrl.u32 %v715_v26, 7  ;;  %v1311_v17 = vld [vmem:[%s1783_s12 + $0x50] ss:$8 sps:$4 sm:$0xff]   ;;  %v1312_v18 = vld [vmem:[%s1783_s12 + $0x64] ss:$8 sps:$4 sm:$0xff]   ;;  %s1187_s20 = sshll.u32 %s1605_s25, 6 }
 0x1cd   : > { %v1314_v41 = vld [vmem:[%s1783_s12 + $0x60] ss:$8 sps:$4 sm:$0xff]   ;;  %v1315_v33 = vld [vmem:[%s1783_s12 + $0x74] ss:$8 sps:$4 sm:$0xff]   ;;  %v1317_v32 = vld [vmem:[%s1783_s12 + $0x70] ss:$8 sps:$4 sm:$0xff]   ;;  %s1917_s14 = scalar_lea.hbm %s1967_s6, %s1187_s20 }
 0x1ce   : > { %913 = vmatpush1.bf16.msra.mxu0 %v1299_v14  ;;  %v736_v34 = vunpack.c.0.s8 %v735_v28  ;;  %v1146_v39 = vld.sshfl [vmem:[#allocation2] sm:$0x11 pattern:$0x75316420]  ;;  %v1318_v35 = vld [vmem:[%s1783_s12 + $0x84] ss:$8 sps:$4 sm:$0xff]  }
 0x1cf   : > { %914 = vmatprep.subr.bf16.mxu0 %v1300_v21  ;;  %v733_v40 = vcombine.high %v1146_v39, %v1146_v39  ;;  %v1320_v43 = vld [vmem:[%s1783_s12 + $0x80] ss:$8 sps:$4 sm:$0xff]   ;;  %v1321_v38 = vld [vmem:[%s1783_s12 + $0x94] ss:$8 sps:$4 sm:$0xff]   ;;  %v1323_v44 = vld [vmem:[%s1783_s12 + $0x90] ss:$8 sps:$4 sm:$0xff]  }
 0x1d0   : > { %v739_v36 = vsub.s32 %v736_v34, %v716_v31  ;;  %v1324_v45 = vld [vmem:[%s1783_s12 + $0xa4] ss:$8 sps:$4 sm:$0xff]   ;;  %v1326_v46 = vld [vmem:[%s1783_s12 + $0xa0] ss:$8 sps:$4 sm:$0xff]   ;;  %v1327_v47 = vld [vmem:[%s1783_s12 + $0xb4] ss:$8 sps:$4 sm:$0xff]  }
 0x1d1   : > { %v1329_v48 = vld [vmem:[%s1783_s12 + $0xb0] ss:$8 sps:$4 sm:$0xff]   ;;  %v1330_v49 = vld [vmem:[%s1783_s12 + $0xc4] ss:$8 sps:$4 sm:$0xff]   ;;  %v1332_v50 = vld [vmem:[%s1783_s12 + $0xc0] ss:$8 sps:$4 sm:$0xff]  }
 0x1d2   : > { %915 = vmatpush1.bf16.msra.mxu0 %v1302_v22  ;;  %v747_v42 = vrot.slane %v733_v40, %v739_v36  ;;  %v1333_v15 = vld [vmem:[%s1783_s12 + $0xd4] ss:$8 sps:$4 sm:$0xff]   ;;  %v1335_v51 = vld [vmem:[%s1783_s12 + $0xd0] ss:$8 sps:$4 sm:$0xff]   ;;  %v1336_v52 = vld [vmem:[%s1783_s12 + $0xe4] ss:$8 sps:$4 sm:$0xff]   ;;  %v740_v56 = vrot.slane %v1146_v39, %v739_v36 }
 0x1d3   : > { %916 = vmatprep.subr.bf16.mxu0 %v1303_v23  ;;  %v1338_v53 = vld [vmem:[%s1783_s12 + $0xe0] ss:$8 sps:$4 sm:$0xff]   ;;  %v1339_v54 = vld [vmem:[%s1783_s12 + $0xf4] ss:$8 sps:$4 sm:$0xff]   ;;  %v1341_v55 = vld [vmem:[%s1783_s12 + $0xf0] ss:$8 sps:$4 sm:$0xff]  }
 0x1d4   : > { %942 = vmatprep.mubr.bf16.mxu0 %v747_v42  ;;  %v717_v57 = vsub.s32 0, %v716_v31  ;;  %v713_v58 = vld [vmem:[%s342_s28] sm:$0x3]  ;;  %v721_v37 = vsub.s32 1, %v716_v31  ;;  %s992_s11 = sshll.u32 %s1803_s8, 4  ;;  %s978_s13 = scalar_lea.sflag [#allocation5], %s1779_s17  ;;  %s1919_s11 = int_to_ptr.vmem [resolvable:$true] %s992_s11 }
 0x1d5   : > { %v1179_v60 = vld.sshfl [vmem:[%s1801_s29] sm:$0x33 pattern:$0x76325410]  ;;  %s1456_s18 = scalar_lea.vmem %s1919_s11, 64  ;;  %p1993_p0 = scmp.ne.s32.totalorder %s1977_s9, 0 }
 0x1d6   : > { %917 = vmatpush1.bf16.msra.mxu0 %v1305_v24  ;;  %v718_v59 = vrot.slane %v713_v58, %v717_v57  ;;  %v722_v20 = vrot.slane %v713_v58, %v721_v37  ;;  %v960_v62 = vcombine.high %v1179_v60, %v1179_v60  ;;  %p1457_p2 = scmp.ne.s32.totalorder %s1919_s11, %s1456_s18  ;;  %s1548_s25 = smov [#allocation11]  }
 0x1d7   : > { %918 = vmatprep.subr.bf16.mxu0 %v1306_v25  ;;  %s1460_s19 = sshll.u32 %s1548_s25, 4  ;;  %s1461_s19 = int_to_ptr.vmem [resolvable:$false] %s1460_s19 }
 0x1d8   : > { %p1458_p9 = pnand %p1457_p2, %p1993_p0  ;;  %s1462_s28 = scalar_lea.vmem %s1461_s19, 128 }
 0x1d9   : > { %p1463_p11 = scmp.lt.s32.totalorder %s1919_s11, %s1461_s19  ;;  %p1464_p12 = scmp.lt.s32.totalorder %s1462_s28, %s1456_s18 }
 0x1da   : > { %919 = vmatpush1.bf16.msra.mxu0 %v1308_v29  ;;  %p1459_p8 = pneg %p1458_p9 }
 0x1db   : > { %920 = vmatprep.subr.bf16.mxu0 %v1309_v30  ;;  %p1465_p1 = por %p1464_p12, %p1463_p11 }
 0x1dd   : > { %p1466_p6 = pnand %p1465_p1, %p1459_p8 }
 0x1de   : > { %921 = vmatpush1.bf16.msra.mxu0 %v1311_v17 }
 0x1df   : > { %922 = vmatprep.subr.bf16.mxu0 %v1312_v18 }
 0x1e2   : > { %923 = vmatpush1.bf16.msra.mxu0 %v1314_v41 }
 0x1e3   : > { %924 = vmatprep.subr.bf16.mxu0 %v1315_v33 }
 0x1e6   : > { %925 = vmatpush1.bf16.msra.mxu0 %v1317_v32 }
 0x1e7   : > { %926 = vmatprep.subr.bf16.mxu0 %v1318_v35 }
 0x1ea   : > { %927 = vmatpush1.bf16.msra.mxu0 %v1320_v43 }
 0x1eb   : > { %928 = vmatprep.subr.bf16.mxu0 %v1321_v38 }
 0x1ee   : > { %929 = vmatpush1.bf16.msra.mxu0 %v1323_v44 }
 0x1ef   : > { %930 = vmatprep.subr.bf16.mxu0 %v1324_v45 }
 0x1f2   : > { %931 = vmatpush1.bf16.msra.mxu0 %v1326_v46 }
 0x1f3   : > { %932 = vmatprep.subr.bf16.mxu0 %v1327_v47 }
 0x1f6   : > { %933 = vmatpush1.bf16.msra.mxu0 %v1329_v48 }
 0x1f7   : > { %934 = vmatprep.subr.bf16.mxu0 %v1330_v49 }
 0x1fa   : > { %935 = vmatpush1.bf16.msra.mxu0 %v1332_v50 }
 0x1fb   : > { %936 = vmatprep.subr.bf16.mxu0 %v1333_v15 }
 0x1fe   : > { %937 = vmatpush1.bf16.msra.mxu0 %v1335_v51 }
 0x1ff   : > { %938 = vmatprep.subr.bf16.mxu0 %v1336_v52 }
 0x202   : > { %939 = vmatpush1.bf16.msra.mxu0 %v1338_v53 }
 0x203   : > { %940 = vmatprep.subr.bf16.mxu0 %v1339_v54 }
 0x206   : > { %941 = vmatpush1.bf16.msra.mxu0 %v1341_v55 }
 0x209   : > { %943 = vmatmul.mubr.bf16.vlgmr.msra.gmra.mrb[0].mxu0 %v740_v56 }
 0x2dc   : > { %v944_v61 = vpop.f32.mrb[0].mxu0 }
 0x2dd   : > { %v945_v63 = vadd.f32 %v944_v61, %v718_v59  ;;  %v946_v0 = vpop.f32.mrb[1].mxu0 }
 0x2de   : > { %v947_v1 = vadd.f32 %v946_v0, %v722_v20  ;;  %v948_v2 = vpop.f32.mrb[2].mxu0 }
 0x2df   : > { %v963_v3 = vadd.f32 %v1179_v60, %v945_v63  ;;  %v949_v4 = vpop.f32.mrb[3].mxu0 }
 0x2e0   : > { %v964_v6 = vadd.f32 %v960_v62, %v947_v1 }
 0x2e2   : > { %v967_v7 = vcombine.low %v963_v3, %v964_v6 }
 0x2e4   : > { %1180 = vst.sshfl [vmem:[%s1803_s8] sm:$0x33 pattern:$0x76325410] %v967_v7 }
 0x2e5   : > { %1469 = shalt.err (!%p1466_p6)
}
 0x2e6   : > { %s1470_s17 = scalar_lea.hbm %s1917_s14, 64  ;;  %s1474_s7 = scalar_lea.hbm %s1967_s6, 192 }
 0x2e7   : > { %p1471_p13 = scmp.ne.s32.totalorder %s1917_s14, %s1470_s17  ;;  %p1475_p7 = scmp.lt.u32.totalorder %s1917_s14, %s1967_s6 }
 0x2e8   : > { %p1476_p5 = scmp.lt.u32.totalorder %s1474_s7, %s1470_s17  ;;  %p1478_p2 = scmp.lt.u32.totalorder %s1470_s17, %s1917_s14 }
 0x2e9   : > { %p1472_p3 = pnand %p1471_p13, %p1993_p0 }
 0x2ea   : > { %p1477_p10 = por %p1476_p5, %p1475_p7 }
 0x2eb   : > { %p1473_p4 = pneg %p1472_p3 }
 0x2ec   : > { %p1479_p9 = por %p1478_p2, %p1477_p10 }
 0x2ee   : > { %p1480_p8 = pnand %p1479_p9, %p1473_p4 }
 0x2f0   : > { %1483 = shalt.err (!%p1480_p8)
}
 0x2f1   : > { %1210 = dma.vmem_to_hbm [thread:$0]  (%p1993_p0), %s1919_s11, 64, %s1917_s14, %s978_s13  }
 0x2f2 PF: > { %p1237_p11 = scmp.ge.s32.totalorder %s1530_s24, 2  ;;  %s1004_s16 = sand.u32 1, %s1518_s21  }
 0x2f3   : > { %p1994_p12 = scmp.ne.s32.totalorder %s1978_s10, 0  ;;  %s1005_s30 = scalar_lea.sflag [#allocation5], %s1004_s16 }
 0x2f5   : > { %p1227_p1 = pnand %p1237_p11, %p1994_p12 }
 0x2f7   : > { %1513 = dma.done.wait (!%p1227_p1), %s1005_s30, 64  }
 0x2f8   : > { %1515 = vsyncadd (!%p1227_p1), %s1005_s30, 4294967232  ;;  %s1995_s20 = sld [smem:[#allocation16_spill]]  ;;  %p21_p6 = scmp.ge.s32.totalorder %s1609_s27, 5  }
 0x2f9   : > { %s1996_s21 = smov %s1522_s22  ;;  %s1997_s22 = smov %s1526_s23 }
 0x2fa   : > { %s1999_s24 = smov %s1609_s27  ;;  %23 = sbr.rel (!%p21_p6) target bundleno = 9 (0x9), region = 112 }
 0x2fe   : > { %s1998_s23 = smov %s1995_s20 }
 0x301   :  { %1010 = vsyncpa [#allocation4], 1 }
 0x302   :  { %1012 = vsyncpa [#allocation4 + $0x1], 1 }
 0x303   :  { %1013 = vsyncpa [#allocation7], 1 }
 0x304   :  { %1014 = vsyncpa [#allocation10], 1 }
 0x305   :  { %1016 = vsyncpa [#allocation10 + $0x1], 1 }
 0x306   :  { %1017 = vsyncpa [#allocation5], 1 }
 0x307   :  { %1019 = vsyncpa [#allocation5 + $0x1], 1 }

</bundles_post_ra>
